<compile_context>
chip_gen: v7x
topology: tpu7x:2x2x1
jax: 0.10.0
libtpu: 0.0.40
codegen_flags: <defaults>
</compile_context>

<pallas_src>
import functools

import jax
import jax.numpy as jnp
from jax.experimental import pallas as pl
from jax.experimental.pallas import tpu as pltpu


def _round_up(v, m):
    return (v + m - 1) // m * m


def _pick_node_tile(n, target=512, max_pad_frac=0.10):
    """Largest multiple-of-128 node tile <= target with small padding of n."""
    n128 = _round_up(n, 128)
    t = max(128, min((target // 128) * 128, n128))
    best = 128
    while t >= 128:
        pad = _round_up(n, t) - n
        if pad <= max_pad_frac * n or pad <= n128 - n:
            best = t
            break
        t -= 128
    return best


def _row_axis_semantics(grid_rows):
    # v7x has 2 TensorCores per chip: shard the row axis across them.
    try:
        kind = jax.devices()[0].device_kind.lower()
    except Exception:  # pragma: no cover
        kind = ""
    if "v7" in kind and grid_rows % 2 == 0:
        return pltpu.CORE_PARALLEL
    return pltpu.PARALLEL


# ---------------------------------------------------------------------------
# Kernels
# ---------------------------------------------------------------------------
def linear_kernel(x_ref, w_ref, o_ref):
    # xw = x @ W   ([tm, F_pad] @ [F_pad, C_pad]); f32 accumulate, bf16 store.
    o_ref[...] = jnp.dot(
        x_ref[...], w_ref[...], preferred_element_type=jnp.float32
    ).astype(o_ref.dtype)


def _rhs_block(h_ref, k, tk, rhs_resident):
    if rhs_resident:
        start = pl.multiple_of(k * tk, tk)
        return h_ref[pl.ds(start, tk), :]
    return h_ref[...]


def prop_kernel(adj_ref, h_ref, o_ref, acc_ref, *, tk, rhs_resident):
    # One propagation step: o = Â @ h, reduced over the k (column-block) axis.
    k = pl.program_id(1)

    @pl.when(k == 0)
    def _():
        acc_ref[...] = jnp.zeros_like(acc_ref)

    acc_ref[...] += jnp.dot(
        adj_ref[...], _rhs_block(h_ref, k, tk, rhs_resident),
        preferred_element_type=jnp.float32,
    )

    @pl.when(k == pl.num_programs(1) - 1)
    def _():
        o_ref[...] = acc_ref[...].astype(o_ref.dtype)


def prop_bias_logsoftmax_kernel(adj_ref, h_ref, b_ref, o_ref, acc_ref, *,
                                tk, rhs_resident, num_classes):
    # Final propagation + bias + log_softmax over the (padded) class axis.
    k = pl.program_id(1)

    @pl.when(k == 0)
    def _():
        acc_ref[...] = jnp.zeros_like(acc_ref)

    acc_ref[...] += jnp.dot(
        adj_ref[...], _rhs_block(h_ref, k, tk, rhs_resident),
        preferred_element_type=jnp.float32,
    )

    @pl.when(k == pl.num_programs(1) - 1)
    def _():
        z = acc_ref[...] + b_ref[...]                         # [tm, C_pad] f32
        lane = jax.lax.broadcasted_iota(jnp.int32, z.shape, 1)
        valid = lane < num_classes
        z = jnp.where(valid, z, jnp.float32(-1e30))           # mask pad classes
        m = jnp.max(z, axis=1, keepdims=True)
        s = z - m
        e = jnp.where(valid, jnp.exp(s), jnp.float32(0.0))
        lse = jnp.log(jnp.sum(e, axis=1, keepdims=True))
        o_ref[...] = s - lse


# ---------------------------------------------------------------------------
# Wrapper
# ---------------------------------------------------------------------------
def sgc_forward(adj, x, w, b, *, node_tile=512):
    n, f = x.shape
    c = w.shape[1]

    t = _pick_node_tile(n, node_tile)
    tm = tk = t
    n_pad = _round_up(n, t)
    f_pad = _round_up(f, 16)     # bf16 sublane tile only; no 128-lane inflation
    c_pad = _round_up(c, 128)

    # Pad to aligned shapes and cast matmul operands to bf16.
    adj_p = jnp.pad(adj, ((0, n_pad - n), (0, n_pad - n))).astype(jnp.bfloat16)
    x_p = jnp.pad(x, ((0, n_pad - n), (0, f_pad - f))).astype(jnp.bfloat16)
    w_p = jnp.pad(w, ((0, f_pad - f), (0, c_pad - c))).astype(jnp.bfloat16)
    b_p = jnp.pad(b.astype(jnp.float32), ((0, 0), (0, c_pad - c)))

    grid_rows = n_pad // tm
    grid_k = n_pad // tk
    row_sem = _row_axis_semantics(grid_rows)

    # RHS (xw / h) fully VMEM-resident when it fits: read once per call instead
    # of once per row tile.  Streaming fallback only for very large graphs.
    rhs_resident = (2 * n_pad * c_pad * 2) <= 24 * 2**20
    if rhs_resident:
        rhs_spec = pl.BlockSpec((n_pad, c_pad), lambda i, k: (0, 0))
        rhs_bytes = 2 * n_pad * c_pad * 2
    else:
        rhs_spec = pl.BlockSpec((tk, c_pad), lambda i, k: (k, 0))
        rhs_bytes = 2 * tk * c_pad * 2

    # Explicit VMEM budget (double-buffered adj + resident RHS + out + acc).
    prop_vmem = (2 * tm * tk * 2          # adj double buffer (bf16)
                 + rhs_bytes              # xw / h
                 + 2 * tm * c_pad * 4     # output double buffer (f32 worst)
                 + tm * c_pad * 4         # f32 accumulator scratch
                 + 2 * 8 * c_pad * 4)     # bias block
    vmem_limit = int(min(64 * 2**20, max(2 * prop_vmem, 32 * 2**20)))
    prop_params = pltpu.CompilerParams(
        dimension_semantics=(row_sem, pltpu.ARBITRARY),
        vmem_limit_bytes=vmem_limit)

    # 1) xw = x @ W   (row-tiled; unpadded F fits in a single K block)
    xw = pl.pallas_call(
        linear_kernel,
        out_shape=jax.ShapeDtypeStruct((n_pad, c_pad), jnp.bfloat16),
        grid=(grid_rows,),
        in_specs=[
            pl.BlockSpec((tm, f_pad), lambda i: (i, 0)),
            pl.BlockSpec((f_pad, c_pad), lambda i: (0, 0)),
        ],
        out_specs=pl.BlockSpec((tm, c_pad), lambda i: (i, 0)),
        compiler_params=pltpu.CompilerParams(dimension_semantics=(row_sem,)),
    )(x_p, w_p)

    # 2) h = Â @ xw
    h = pl.pallas_call(
        functools.partial(prop_kernel, tk=tk, rhs_resident=rhs_resident),
        out_shape=jax.ShapeDtypeStruct((n_pad, c_pad), jnp.bfloat16),
        grid=(grid_rows, grid_k),
        in_specs=[
            pl.BlockSpec((tm, tk), lambda i, k: (i, k)),
            rhs_spec,
        ],
        out_specs=pl.BlockSpec((tm, c_pad), lambda i, k: (i, 0)),
        scratch_shapes=[pltpu.VMEM((tm, c_pad), jnp.float32)],
        compiler_params=prop_params,
    )(adj_p, xw)

    # 3) out = log_softmax(Â @ h + b, axis=1)
    out_pad = pl.pallas_call(
        functools.partial(prop_bias_logsoftmax_kernel, tk=tk,
                          rhs_resident=rhs_resident, num_classes=c),
        out_shape=jax.ShapeDtypeStruct((n_pad, c_pad), jnp.float32),
        grid=(grid_rows, grid_k),
        in_specs=[
            pl.BlockSpec((tm, tk), lambda i, k: (i, k)),
            rhs_spec,
            pl.BlockSpec((1, c_pad), lambda i, k: (0, 0)),
        ],
        out_specs=pl.BlockSpec((tm, c_pad), lambda i, k: (i, 0)),
        scratch_shapes=[pltpu.VMEM((tm, c_pad), jnp.float32)],
        compiler_params=prop_params,
    )(adj_p, h, b_p)

    return out_pad[:n, :c]


# ---------------------------------------------------------------------------
# Graph-normalization glue (edge_index -> dense Â = D^-1/2 (A+I) D^-1/2)
# ---------------------------------------------------------------------------
def normalized_adjacency(edge_index, num_nodes):
    # TODO(synk): scatter from edge_index has no clean Pallas equivalent; kept
    # as plain-JAX glue (and it is cached in the PyTorch module anyway).
    src, dst = edge_index[0], edge_index[1]
    adj = jnp.zeros((num_nodes, num_nodes), jnp.float32)
    adj = adj.at[dst, src].set(1.0)                    # message flows src -> dst
    adj = adj + jnp.eye(num_nodes, dtype=jnp.float32)  # self-loops
    deg = jnp.sum(adj, axis=1)
    d_inv_sqrt = jax.lax.rsqrt(jnp.maximum(deg, 1e-12))
    return d_inv_sqrt[:, None] * adj * d_inv_sqrt[None, :]


if __name__ == "__main__":
    # Small synthetic "Planetoid-like" problem (N chosen to exercise the grid).
    num_nodes = 256       # N
    num_features = 16     # dataset.num_features
    num_classes = 8       # dataset.num_classes
    num_edges = 1024      # E

    key = jax.random.PRNGKey(0)
    k_x, k_src, k_dst, k_w, k_b = jax.random.split(key, 5)

    x = jax.random.normal(k_x, (num_nodes, num_features), dtype=jnp.float32)
    edge_index = jnp.stack([
        jax.random.randint(k_src, (num_edges,), 0, num_nodes),
        jax.random.randint(k_dst, (num_edges,), 0, num_nodes),
    ])  # [2, E]

    # SGConv's internal Linear parameters (deterministic, glorot-ish scale).
    scale = 1.0 / jnp.sqrt(jnp.float32(num_features))
    w = jax.random.uniform(k_w, (num_features, num_classes),
                           minval=-scale, maxval=scale, dtype=jnp.float32)
    b = jax.random.uniform(k_b, (1, num_classes),
                           minval=-scale, maxval=scale, dtype=jnp.float32)

    adj = normalized_adjacency(edge_index, num_nodes)

    out = sgc_forward(adj, x, w, b)
    jax.block_until_ready(out)

    # Reference mirroring the kernel numerics (bf16-rounded matmul operands and
    # intermediates, f32 accumulation, f32 bias + log_softmax).
    a32 = adj.astype(jnp.bfloat16).astype(jnp.float32)
    x32 = x.astype(jnp.bfloat16).astype(jnp.float32)
    w32 = w.astype(jnp.bfloat16).astype(jnp.float32)
    xw_r = (x32 @ w32).astype(jnp.bfloat16).astype(jnp.float32)
    h_r = (a32 @ xw_r).astype(jnp.bfloat16).astype(jnp.float32)
    z_r = a32 @ h_r + b
    ref = jax.nn.log_softmax(z_r, axis=1)

    assert out.shape == (num_nodes, num_classes)
    err = float(jnp.max(jnp.abs(out - ref)))
    assert jnp.allclose(out, ref, atol=2e-3, rtol=2e-3), f"max abs err {err}"

    print("KERNEL_OK")
</pallas_src>

<mosaic_0001>
module attributes {stable_mosaic.version = 11 : i64} {
  func.func @linear_kernel(%arg0: i32, %arg1: memref<256x16xbf16, #tpu.memory_space<vmem>>, %arg2: memref<16x128xbf16, #tpu.memory_space<vmem>>, %arg3: memref<256x128xbf16, #tpu.memory_space<vmem>>) attributes {dimension_semantics = [#tpu.dimension_semantics<parallel>], iteration_bounds = array<i64: 1>, scalar_prefetch = 0 : i64, scratch_operands = 0 : i64, tpu.core_type = #tpu.core_type<tc>, window_params = [{transform_indices = @transform_0, window_bounds = array<i64: 256, 16>}, {pipeline_mode = #tpu.pipeline_mode<synchronous>, transform_indices = @transform_1, window_bounds = array<i64: 16, 128>}, {transform_indices = @transform_2, window_bounds = array<i64: 256, 128>}]} {
    %c0 = arith.constant 0 : index
    %c0_0 = arith.constant 0 : index
    %0 = vector.load %arg1[%c0, %c0_0] : memref<256x16xbf16, #tpu.memory_space<vmem>>, vector<256x16xbf16>
    %c0_1 = arith.constant 0 : index
    %c0_2 = arith.constant 0 : index
    %1 = vector.load %arg2[%c0_1, %c0_2] : memref<16x128xbf16, #tpu.memory_space<vmem>>, vector<16x128xbf16>
    %cst = arith.constant dense<0.000000e+00> : vector<256x128xf32>
    %2 = tpu.matmul %0, %1, %cst {dimension_numbers = #tpu.dot_dimension_numbers<[1], [0], [0], [1], [0, 0, 1, 1], [], []>} : vector<256x16xbf16>, vector<16x128xbf16>, vector<256x128xf32> -> vector<256x128xf32>
    %3 = arith.truncf %2 : vector<256x128xf32> to vector<256x128xbf16>
    %c0_3 = arith.constant 0 : index
    %c0_4 = arith.constant 0 : index
    %4 = vector.load %arg3[%c0_3, %c0_4] : memref<256x128xbf16, #tpu.memory_space<vmem>>, vector<256x128xbf16>
    tpu.vector_store %arg3[%c0_3, %c0_4], %3 {strides = array<i32>} : memref<256x128xbf16, #tpu.memory_space<vmem>>, vector<256x128xbf16>,
    return
  }
  func.func @transform_0(%arg0: i32) -> (i32, i32) {
    %c0_i32 = arith.constant 0 : i32
    %c0_i32_0 = arith.constant 0 : i32
    return %arg0, %c0_i32 : i32, i32
  }
  func.func @transform_1(%arg0: i32) -> (i32, i32) {
    %c0_i32 = arith.constant 0 : i32
    %c0_i32_0 = arith.constant 0 : i32
    %c0_i32_1 = arith.constant 0 : i32
    return %c0_i32, %c0_i32_0 : i32, i32
  }
  func.func @transform_2(%arg0: i32) -> (i32, i32) {
    %c0_i32 = arith.constant 0 : i32
    %c0_i32_0 = arith.constant 0 : i32
    return %arg0, %c0_i32 : i32, i32
  }
}

</mosaic_0001>

<bundles_post_ra>
// kernel: tpu_custom_call.1
= control target key start
LH: loop header
LB: loop body
LE: loop exit
PB: predicated region body
PF: predicated region fallthrough
CT: control target
= control target key end

     0   :  { %vm133_vm0 = vcmask 130048   ;;  %s905_s0 = inlined_call_operand.vmem [shape: bf16[256,16], index: 0, kind: input, shape index: {}]   ;;  %s906_s1 = inlined_call_operand.vmem [shape: bf16[16,128], index: 1, kind: input, shape index: {}]   ;;  %s907_s2 = inlined_call_operand.hbm [shape: bf16[256,128], index: 2, kind: output, shape index: {}]  }
   0x1   :  { %v767_v0 = vld [vmem:[%s906_s1] sm:$0xff]   ;;  %v770_v3 = vld [vmem:[%s905_s0 + $0x8] sm:$0xff]   ;;  %v772_v5 = vld [vmem:[%s905_s0 + $0x10] sm:$0xff]  }
   0x2   :  { %v768_v1 = vld [vmem:[%s905_s0] sm:$0xff]   ;;  %728 = vmatprep.subr.bf16.mxu0 %v767_v0  ;;  %762 = vmatprep.subr.bf16.mxu1 %v767_v0  ;;  %v771_v4 = vld [vmem:[%s905_s0 + $0x48] sm:$0xff]   ;;  %v773_v6 = vld [vmem:[%s905_s0 + $0x50] sm:$0xff]  }
   0x3   :  { %v769_v2 = vld [vmem:[%s905_s0 + $0x40] sm:$0xff]   ;;  %729 = vmatpush3.bf16.msra.mxu0 %v767_v0  ;;  %763 = vmatpush3.bf16.msra.mxu1 %v767_v0  ;;  %v774_v7 = vld [vmem:[%s905_s0 + $0x18] sm:$0xff]  }
   0x4   :  { %730 = vmatprep.mubr.msk.bf16.mxu0 %vm133_vm0, %v768_v1  ;;  %746 = vmatprep.mubr.msk.bf16.mxu1 %vm133_vm0, %v769_v2  ;;  %v775_v8 = vld [vmem:[%s905_s0 + $0x58] sm:$0xff]   ;;  %v776_v9 = vld [vmem:[%s905_s0 + $0x20] sm:$0xff]  }
   0x5   :  { %v777_v10 = vld [vmem:[%s905_s0 + $0x60] sm:$0xff]  }
   0x6   :  { %731 = vmatmul.mubr.msk.bf16.vlgmr.msra.gmra.mrb[0].mxu0 %vm133_vm0, %v770_v3  ;;  %747 = vmatmul.mubr.msk.bf16.vlgmr.msra.gmra.mrb[0].mxu1 %vm133_vm0, %v771_v4 }
   0x7   :  { %734 = vmatprep.mubr.msk.bf16.mxu0 %vm133_vm0, %v772_v5  ;;  %750 = vmatprep.mubr.msk.bf16.mxu1 %vm133_vm0, %v773_v6 }
   0xe   :  { %735 = vmatmul.mubr.msk.bf16.gmra.mrb[4].mxu0 %vm133_vm0, %v774_v7  ;;  %751 = vmatmul.mubr.msk.bf16.gmra.mrb[4].mxu1 %vm133_vm0, %v775_v8 }
   0xf   :  { %738 = vmatprep.mubr.msk.bf16.mxu0 %vm133_vm0, %v776_v9  ;;  %754 = vmatprep.mubr.msk.bf16.mxu1 %vm133_vm0, %v777_v10 }
  0x10   :  { %7 = vsyncpa [#allocation3], 0  ;;  %v778_v11 = vld [vmem:[%s905_s0 + $0x28] sm:$0xff]   ;;  %v780_v13 = vld [vmem:[%s905_s0 + $0x30] sm:$0xff]  }
  0x11   :  { %v779_v12 = vld [vmem:[%s905_s0 + $0x68] sm:$0xff]   ;;  %v781_v14 = vld [vmem:[%s905_s0 + $0x70] sm:$0xff]   ;;  %v782_v15 = vld [vmem:[%s905_s0 + $0x38] sm:$0xff]  }
  0x12   :  { %v783_v16 = vld [vmem:[%s905_s0 + $0x78] sm:$0xff]   ;;  %s808_s0 = smov [#allocation2]  }
  0x13   :  { %s508_s14 = sshll.u32 %s808_s0, 4  ;;  %s509_s14 = int_to_ptr.vmem [resolvable:$true] %s508_s14 }
  0x14   :  { %s784_s15 = scalar_lea.vmem %s509_s14, 2048  ;;  %p789_p1 = scmp.lt.s32.totalorder %s509_s14, %s509_s14 }
  0x15   :  { %p785_p0 = scmp.ne.s32.totalorder %s509_s14, %s784_s15  ;;  %p790_p2 = scmp.lt.s32.totalorder %s784_s15, %s784_s15 }
  0x16   :  { %739 = vmatmul.mubr.msk.bf16.gmra.mrb[8].mxu0 %vm133_vm0, %v778_v11  ;;  %755 = vmatmul.mubr.msk.bf16.gmra.mrb[8].mxu1 %vm133_vm0, %v779_v12 }
  0x17   :  { %742 = vmatprep.mubr.msk.bf16.mxu0 %vm133_vm0, %v780_v13  ;;  %758 = vmatprep.mubr.msk.bf16.mxu1 %vm133_vm0, %v781_v14  ;;  %p791_p3 = por %p790_p2, %p789_p1 }
  0x19   :  { %p792_p4 = pnand %p791_p3, %p785_p0 }
  0x1e   :  { %743 = vmatmul.mubr.msk.bf16.gmra.mrb[12].mxu0 %vm133_vm0, %v782_v15  ;;  %759 = vmatmul.mubr.msk.bf16.gmra.mrb[12].mxu1 %vm133_vm0, %v783_v16 }
  0xd9   :  { %v732_v17 = vpop.f32.mrb[0].mxu0  ;;  %v748_v18 = vpop.f32.mrb[0].mxu1 }
  0xda   :  { %v216_v19 = vpop.f32.mrb[1].mxu0  ;;  %v280_v20 = vpop.f32.mrb[1].mxu1 }
  0xdb   :  { %v733_v21 = vpop.f32.mrb[2].mxu0  ;;  %v749_v22 = vpop.f32.mrb[2].mxu1 }
  0xdc   :  { %v624_v23 = vpack.c.bf16 %v733_v21, %v732_v17  ;;  %v664_v24 = vpack.c.bf16 %v749_v22, %v748_v18  ;;  %v219_v25 = vpop.f32.mrb[3].mxu0  ;;  %v283_v26 = vpop.f32.mrb[3].mxu1 }
  0xdd   :  { %v619_v27 = vpack.c.bf16 %v219_v25, %v216_v19  ;;  %v659_v28 = vpack.c.bf16 %v283_v26, %v280_v20 }
  0xde   :  { %696 = vst [vmem:[#allocation2 + $0x8] sm:$0xff] %v624_v23   ;;  %704 = vst [vmem:[#allocation2 + $0x48] sm:$0xff] %v664_v24  }
  0xdf   :  { %620 = vst [vmem:[#allocation2] sm:$0xff] %v619_v27   ;;  %703 = vst [vmem:[#allocation2 + $0x40] sm:$0xff] %v659_v28  }
  0xe1   :  { %v736_v29 = vpop.f32.mrb[4].mxu0  ;;  %v752_v30 = vpop.f32.mrb[4].mxu1 }
  0xe2   :  { %v232_v31 = vpop.f32.mrb[5].mxu0  ;;  %v296_v32 = vpop.f32.mrb[5].mxu1 }
  0xe3   :  { %v737_v33 = vpop.f32.mrb[6].mxu0  ;;  %v753_v34 = vpop.f32.mrb[6].mxu1 }
  0xe4   :  { %v634_v35 = vpack.c.bf16 %v737_v33, %v736_v29  ;;  %v674_v36 = vpack.c.bf16 %v753_v34, %v752_v30  ;;  %v235_v37 = vpop.f32.mrb[7].mxu0  ;;  %v299_v38 = vpop.f32.mrb[7].mxu1 }
  0xe5   :  { %v629_v39 = vpack.c.bf16 %v235_v37, %v232_v31  ;;  %v669_v40 = vpack.c.bf16 %v299_v38, %v296_v32 }
  0xe6   :  { %698 = vst [vmem:[#allocation2 + $0x18] sm:$0xff] %v634_v35   ;;  %706 = vst [vmem:[#allocation2 + $0x58] sm:$0xff] %v674_v36  }
  0xe7   :  { %697 = vst [vmem:[#allocation2 + $0x10] sm:$0xff] %v629_v39   ;;  %705 = vst [vmem:[#allocation2 + $0x50] sm:$0xff] %v669_v40  }
  0xe9   :  { %v740_v41 = vpop.f32.mrb[8].mxu0  ;;  %v756_v42 = vpop.f32.mrb[8].mxu1 }
  0xea   :  { %v248_v43 = vpop.f32.mrb[9].mxu0  ;;  %v312_v44 = vpop.f32.mrb[9].mxu1 }
  0xeb   :  { %v741_v45 = vpop.f32.mrb[10].mxu0  ;;  %v757_v46 = vpop.f32.mrb[10].mxu1 }
  0xec   :  { %v644_v47 = vpack.c.bf16 %v741_v45, %v740_v41  ;;  %v684_v48 = vpack.c.bf16 %v757_v46, %v756_v42  ;;  %v251_v49 = vpop.f32.mrb[11].mxu0  ;;  %v315_v50 = vpop.f32.mrb[11].mxu1 }
  0xed   :  { %v639_v51 = vpack.c.bf16 %v251_v49, %v248_v43  ;;  %v679_v52 = vpack.c.bf16 %v315_v50, %v312_v44 }
  0xee   :  { %700 = vst [vmem:[#allocation2 + $0x28] sm:$0xff] %v644_v47   ;;  %708 = vst [vmem:[#allocation2 + $0x68] sm:$0xff] %v684_v48  }
  0xef   :  { %699 = vst [vmem:[#allocation2 + $0x20] sm:$0xff] %v639_v51   ;;  %707 = vst [vmem:[#allocation2 + $0x60] sm:$0xff] %v679_v52  }
  0xf1   :  { %v744_v53 = vpop.f32.mrb[12].mxu0  ;;  %v760_v54 = vpop.f32.mrb[12].mxu1 }
  0xf2   :  { %v264_v55 = vpop.f32.mrb[13].mxu0  ;;  %v328_v56 = vpop.f32.mrb[13].mxu1 }
  0xf3   :  { %v745_v57 = vpop.f32.mrb[14].mxu0  ;;  %v761_v58 = vpop.f32.mrb[14].mxu1 }
  0xf4   :  { %v654_v59 = vpack.c.bf16 %v745_v57, %v744_v53  ;;  %v694_v60 = vpack.c.bf16 %v761_v58, %v760_v54  ;;  %v267_v61 = vpop.f32.mrb[15].mxu0  ;;  %v331_v62 = vpop.f32.mrb[15].mxu1 }
  0xf5   :  { %v649_v63 = vpack.c.bf16 %v267_v61, %v264_v55  ;;  %v689_v0 = vpack.c.bf16 %v331_v62, %v328_v56 }
  0xf6   :  { %702 = vst [vmem:[#allocation2 + $0x38] sm:$0xff] %v654_v59   ;;  %710 = vst [vmem:[#allocation2 + $0x78] sm:$0xff] %v694_v60  }
  0xf7   :  { %701 = vst [vmem:[#allocation2 + $0x30] sm:$0xff] %v649_v63   ;;  %709 = vst [vmem:[#allocation2 + $0x70] sm:$0xff] %v689_v0  }
  0xf8   :  { %795 = shalt.err (!%p792_p4)
}
  0xf9   :  { %s796_s17 = scalar_lea.hbm %s907_s2, 2048 }
  0xfa   :  { %p797_p5 = scmp.ne.s32.totalorder %s907_s2, %s796_s17  ;;  %p800_p6 = scmp.lt.u32.totalorder %s796_s17, %s907_s2 }
  0xfc   :  { %p802_p7 = pnand %p800_p6, %p797_p5 }
  0xfe   :  { %805 = shalt.err (!%p802_p7)
}
  0xff   :  { %s809_s22 = smov 64   ;;  %s810_s23 = smov 4  }
 0x100   :  { %514 = dma.vmem_to_hbm [thread:$0]  %s509_s14, 2048, %s907_s2, [#allocation3], %s809_s22, %s809_s22, %s810_s23  }
 0x101   :  { %806 = dma.done.wait [#allocation3], 2048  }
 0x102   :  { %807 = vsyncadd [#allocation3], 4294965248 }
 0x103   :  { %518 = vsyncpa [#allocation3], 1 }

</bundles_post_ra>
